<compile_context>
chip_gen: v7x
topology: tpu7x:2x2x1
jax: 0.10.0
libtpu: 0.0.40
codegen_flags: <defaults>
</compile_context>

<pallas_src>
import math
import jax
import jax.numpy as jnp
from jax.experimental import pallas as pl
from jax.experimental.pallas import tpu as pltpu

# ---------------- configuration (small, consistent with the module) ----------------
B = 2            # graphs in batch
N = 16           # max nodes per graph (dense padding)
FIN = 8          # dataset.num_features
HID = 32         # hidden
NUM_LAYERS = 2   # conv1 + 1 extra GCN layer
D = NUM_LAYERS * HID          # 64
HEADS = 5
C = 2            # dataset.num_classes
NCPC = 1         # num_clusters_per_class (=1 so K2 == 3, matching one_hot(...,3))
K1 = NCPC * C                 # num_clusters1 = 2
K2 = NCPC * (C + 1)           # num_clusters2 = 3
HK = HEADS * K2               # all heads stacked = 15
OC = 16          # pool out_channels
TAU = 1.0
LAMBDA1 = 10.0
LAMBDA2 = 0.01

CLUSTER_MAP = jnp.repeat(jnp.arange(C + 1), NCPC)  # [K2]


# ------------------------------- Pallas kernel -------------------------------------
def _imem_pool_kernel(x0_ref, adj_ref, msk_ref, invdeg_ref,
                      w1_ref, b1_ref, w2_ref, b2_ref,
                      bns_ref, bnb_ref,
                      kall_ref, ksq_ref, hsum_ref, hcol_ref,
                      wf_ref, l1b_ref, l2w_ref, l2b_ref,
                      out_ref, ss_ref):
    f32 = jnp.float32
    x0 = x0_ref[0]          # [N, FIN]
    adj = adj_ref[0]        # [N, N]
    msk = msk_ref[0]        # [N, 1]
    inv_deg = invdeg_ref[0]  # [N, 1]  (precomputed exact 1/deg)

    # ---- GCNConv(normalize=False): out = A @ (X W) + b, ReLU, zero padded rows ----
    h1 = jnp.dot(x0, w1_ref[...], preferred_element_type=f32)
    h1 = jnp.dot(adj, h1, preferred_element_type=f32) + b1_ref[...]
    h1 = jnp.maximum(h1, 0.0) * msk
    h2 = jnp.dot(h1, w2_ref[...], preferred_element_type=f32)
    h2 = jnp.dot(adj, h2, preferred_element_type=f32) + b2_ref[...]
    h2 = jnp.maximum(h2, 0.0) * msk

    # concat + BatchNorm1d (eval mode); mask after BN so padded rows stay exactly
    # zero (faithful to torch, where BN is applied to the sparse x before padding).
    X = jnp.concatenate([h1, h2], axis=1)                     # [N, D]
    X = (X * bns_ref[...] + bnb_ref[...]) * msk

    # ---- IMPO soft cluster assignment: all heads in one MXU matmul ----
    #   ||x - k||^2 = ||x||^2 - 2 x.k + ||k||^2 ; tau = 1 => kernel = 1/(1 + d2)
    xk = jnp.dot(X, kall_ref[...], preferred_element_type=f32)   # [N, HK]
    x2 = jnp.sum(X * X, axis=1, keepdims=True)                   # [N, 1]
    d2 = x2 + ksq_ref[...] - 2.0 * xk                            # [N, HK]
    dist = 1.0 / (1.0 + d2)                                      # no exp/log (tau=1)
    # per-head normalization + head-sum via tiny constant matmuls
    denom = jnp.dot(dist, hsum_ref[...], preferred_element_type=f32)      # [N, HK]
    Sh = jnp.dot(dist / denom, hcol_ref[...], preferred_element_type=f32)  # [N, K2]
    Sh = Sh * msk
    Sraw = jnp.dot(adj, Sh, preferred_element_type=f32) * inv_deg          # smoothing

    # softmax over clusters + hard one-hot gating (non-gumbel branch)
    e = jnp.exp(Sraw - jnp.max(Sraw, axis=-1, keepdims=True))
    g = e * pl.reciprocal(jnp.sum(e, axis=-1, keepdims=True), approx=True)
    kio = jax.lax.broadcasted_iota(jnp.int32, (N, K2), 1)
    is_max = g >= jnp.max(g, axis=-1, keepdims=True)
    first = jnp.min(jnp.where(is_max, kio, K2), axis=-1, keepdims=True)
    S2 = g * (kio == first).astype(f32)

    # single combined output slab: slot 0 = gated S, slot 1 = S_raw
    ss_ref[0, 0] = S2
    ss_ref[0, 1] = Sraw

    # ---- pooled representation + classifier head ----
    # P = S^T X ; pool.lin and lin1 are both linear with nothing in between, so
    # they are folded into one weight wf: h = relu(vec(P[:K1]) @ wf + b1).
    P = jax.lax.dot_general(S2, X, (((0,), (0,)), ((), ())),
                            preferred_element_type=f32)           # [K2, D]
    xcat = jnp.concatenate([P[c:c + 1, :] for c in range(K1)], axis=1)  # [1, K1*D]
    hcls = jnp.maximum(
        jnp.dot(xcat, wf_ref[...], preferred_element_type=f32) + l1b_ref[...], 0.0)
    # dropout(p=0) is identity
    logits = jnp.dot(hcls, l2w_ref[...], preferred_element_type=f32) + l2b_ref[...]
    lz = logits - jnp.max(logits, axis=-1, keepdims=True)
    out_ref[0] = lz - jnp.log(jnp.sum(jnp.exp(lz), axis=-1, keepdims=True))


def imem_pool_pallas(x0, adj, mask, deg, params):
    msk = mask.astype(jnp.float32)[..., None]      # [B, N, 1]
    inv_deg = (1.0 / deg)[..., None]               # [B, N, 1] exact reciprocal (host)

    # ---- host-side (plain JAX) weight restructuring; traced once under jit ----
    kc = params["k"].reshape(HK, D)                # [HK, D], row index = h*K2 + j
    kall = kc.T                                    # [D, HK]
    ksq = jnp.sum(kc * kc, axis=1)[None, :]        # [1, HK]
    ii = jnp.arange(HK)
    # block-ones matrix: broadcasts each head's sum across its K2 columns
    hsum = (ii[:, None] // K2 == ii[None, :] // K2).astype(jnp.float32)   # [HK, HK]
    # stacked identities: sums the normalized assignments over heads
    hcol = (ii[:, None] % K2 == jnp.arange(K2)[None, :]).astype(jnp.float32)  # [HK, K2]
    # fold pool.lin (no bias) into lin1:  vec((P @ linW)[:K1]) @ W1 == vec(P[:K1]) @ wf
    lin1_wr = params["lin1_wT"].reshape(K1, OC, HID)
    wfused = jnp.einsum("do,coh->cdh", params["lin_wT"], lin1_wr).reshape(K1 * D, HID)

    out3, ss = pl.pallas_call(
        _imem_pool_kernel,
        out_shape=[
            jax.ShapeDtypeStruct((B, 1, C), jnp.float32),
            jax.ShapeDtypeStruct((B, 2, N, K2), jnp.float32),   # [S2 ; Sraw] slab
        ],
        grid=(B,),
        in_specs=[
            pl.BlockSpec((1, N, FIN), lambda b: (b, 0, 0)),
            pl.BlockSpec((1, N, N), lambda b: (b, 0, 0)),
            pl.BlockSpec((1, N, 1), lambda b: (b, 0, 0)),
            pl.BlockSpec((1, N, 1), lambda b: (b, 0, 0)),
            pl.BlockSpec((FIN, HID), lambda b: (0, 0)),
            pl.BlockSpec((1, HID), lambda b: (0, 0)),
            pl.BlockSpec((HID, HID), lambda b: (0, 0)),
            pl.BlockSpec((1, HID), lambda b: (0, 0)),
            pl.BlockSpec((1, D), lambda b: (0, 0)),
            pl.BlockSpec((1, D), lambda b: (0, 0)),
            pl.BlockSpec((D, HK), lambda b: (0, 0)),
            pl.BlockSpec((1, HK), lambda b: (0, 0)),
            pl.BlockSpec((HK, HK), lambda b: (0, 0)),
            pl.BlockSpec((HK, K2), lambda b: (0, 0)),
            pl.BlockSpec((K1 * D, HID), lambda b: (0, 0)),
            pl.BlockSpec((1, HID), lambda b: (0, 0)),
            pl.BlockSpec((HID, C), lambda b: (0, 0)),
            pl.BlockSpec((1, C), lambda b: (0, 0)),
        ],
        out_specs=[
            pl.BlockSpec((1, 1, C), lambda b: (b, 0, 0)),
            pl.BlockSpec((1, 2, N, K2), lambda b: (b, 0, 0, 0)),
        ],
        compiler_params=pltpu.CompilerParams(dimension_semantics=("parallel",)),
    )(x0, adj, msk, inv_deg,
      params["w1"], params["b1"], params["w2"], params["b2"],
      params["bn_scale"], params["bn_shift"],
      kall, ksq, hsum, hcol,
      wfused, params["lin1_b"], params["lin2_wT"], params["lin2_b"])
    return out3[:, 0, :], ss[:, 0], ss[:, 1]


# ------------------------------- loss (plain-JAX glue) ------------------------------
def impo_loss(S, y, mask):
    # torch's boolean fancy-indexing (S[m], y[m].bincount()) is dynamic-shape;
    # implemented here with masked reductions (mathematically identical).
    y_rep = jnp.broadcast_to(y[:, None], (B, N))
    assigned = jnp.argmax(S, axis=-1)
    assigned_class = CLUSTER_MAP[assigned]
    mb = mask
    mask_right = (assigned_class < C) & (assigned_class == y_rep) & mb
    mask_wrong = (assigned_class < C) & (assigned_class != y_rep) & mb
    # (ass_loss is computed in the torch code but not used in the returned loss)
    sum_loss = jnp.mean(jnp.sum(jnp.sum(S, axis=1)[:, :K1], axis=1))
    m = mb & (mask_right | mask_wrong)
    counts = jnp.sum(jax.nn.one_hot(y_rep, C) * m[..., None].astype(jnp.float32),
                     axis=(0, 1))
    bincount = jnp.where(jnp.sum(m) > 0, 1.0 + counts, jnp.ones((C,), jnp.float32))
    w = jnp.max(bincount) / (bincount + 0.001)
    logp = jax.nn.log_softmax(S[:, :, :-1], axis=-1)
    nll = -jnp.take_along_axis(logp, y_rep[..., None], axis=-1)[..., 0]
    wi = w[y_rep]
    mf = m.astype(jnp.float32)
    denom = jnp.sum(wi * mf)
    cel = jnp.where(denom > 0, jnp.sum(wi * mf * nll) / denom, 0.0)
    return LAMBDA1 * cel + LAMBDA2 * sum_loss


def imem_pool_forward(x0, adj, mask, deg, y, params):
    out, S, S_raw = imem_pool_pallas(x0, adj, mask, deg, params)
    total_loss = impo_loss(S, y, mask)
    return out, total_loss, S, S_raw


# ------------------------------- pure-JAX reference ---------------------------------
def reference_forward(x0, adj, mask, deg, params):
    msk = mask.astype(jnp.float32)[..., None]
    h1 = jax.nn.relu(adj @ (x0 @ params["w1"]) + params["b1"]) * msk
    h2 = jax.nn.relu(adj @ (h1 @ params["w2"]) + params["b2"]) * msk
    X = (jnp.concatenate([h1, h2], axis=-1) * params["bn_scale"]
         + params["bn_shift"]) * msk
    kp = params["k"]                                   # [H, K2, D]
    d2 = jnp.sum((X[:, None, None, :, :] - kp[None, :, :, None, :]) ** 2, axis=-1)
    dist = (1.0 + d2 / TAU) ** (-(TAU + 1.0) / 2.0)    # [B, H, K2, N]
    dist = jnp.transpose(dist, (0, 1, 3, 2))           # [B, H, N, K2]
    S = (dist / dist.sum(-1, keepdims=True)).sum(1) * msk
    S = jnp.einsum("bij,bjk->bik", adj, S) / deg[..., None]
    g = jax.nn.softmax(S, axis=-1)
    S2 = g * jax.nn.one_hot(jnp.argmax(g, -1), K2)
    Xp = jnp.einsum("bnk,bnd->bkd", S2, X) @ params["lin_wT"]
    xflat = Xp[:, :K1, :].reshape(B, -1)
    h = jax.nn.relu(xflat @ params["lin1_wT"] + params["lin1_b"])
    logits = h @ params["lin2_wT"] + params["lin2_b"]
    return jax.nn.log_softmax(logits, -1), S2


# ------------------------------------ main ------------------------------------------
if __name__ == "__main__":
    key = jax.random.PRNGKey(0)
    ks = jax.random.split(key, 12)

    # ----- synthetic graph batch -----
    graph_sizes = jnp.array([12, 16])
    mask = jnp.arange(N)[None, :] < graph_sizes[:, None]            # [B, N] bool
    A = jax.random.bernoulli(ks[0], 0.3, (B, N, N))
    A = jnp.logical_or(A, jnp.transpose(A, (0, 2, 1)))              # symmetric (undirected)
    A = A & mask[:, :, None] & mask[:, None, :]
    A = A & ~jnp.eye(N, dtype=bool)[None]
    adj = A.astype(jnp.float32)
    occ = adj.sum(1) + adj.sum(2)                                   # appearances in edge list
    deg = occ / 2.0
    deg = jnp.where(deg == 0.0, 1.0, deg)                           # d[d==0]=1
    x0 = jax.random.normal(ks[1], (B, N, FIN), jnp.float32) * mask[..., None]
    y = jnp.array([0, 1], dtype=jnp.int32)

    # ----- deterministic parameters (shapes from the torch module __init__) -----
    params = {
        "w1": jax.random.normal(ks[2], (FIN, HID), jnp.float32) / math.sqrt(FIN),
        "b1": jnp.zeros((1, HID), jnp.float32),
        "w2": jax.random.normal(ks[3], (HID, HID), jnp.float32) / math.sqrt(HID),
        "b2": jnp.zeros((1, HID), jnp.float32),
        # TODO(synk): BatchNorm1d is hard-coded to eval mode with fresh running
        # stats (mean=0, var=1); trained running stats would just change these.
        "bn_scale": jnp.full((1, D), 1.0 / math.sqrt(1.0 + 1e-5), jnp.float32),
        "bn_shift": jnp.zeros((1, D), jnp.float32),
        # TODO(synk): torch uses orthogonal_ init for k; deterministic gaussian here.
        "k": jax.random.normal(ks[4], (HEADS, K2, D), jnp.float32) / math.sqrt(D),
        "lin_wT": jax.random.normal(ks[5], (D, OC), jnp.float32) / math.sqrt(D),
        "lin1_wT": jax.random.normal(ks[6], (K1 * OC, HID), jnp.float32) / math.sqrt(K1 * OC),
        "lin1_b": jax.random.normal(ks[7], (1, HID), jnp.float32) * 0.01,
        "lin2_wT": jax.random.normal(ks[8], (HID, C), jnp.float32) / math.sqrt(HID),
        "lin2_b": jax.random.normal(ks[9], (1, C), jnp.float32) * 0.01,
    }

    fwd = jax.jit(imem_pool_forward)
    out, total_loss, S, S_raw = fwd(x0, adj, mask, deg, y, params)
    jax.block_until_ready((out, total_loss, S, S_raw))

    # sanity check against pure-JAX reference
    ref_out, ref_S = reference_forward(x0, adj, mask, deg, params)
    assert jnp.all(jnp.isfinite(out)) and jnp.isfinite(total_loss)
    assert jnp.max(jnp.abs(out - ref_out)) < 1e-2, jnp.max(jnp.abs(out - ref_out))
    assert jnp.max(jnp.abs(S - ref_S)) < 1e-2, jnp.max(jnp.abs(S - ref_S))

    print("KERNEL_OK")
</pallas_src>

<mosaic_0001>
module attributes {stable_mosaic.version = 11 : i64} {
  func.func @_imem_pool_kernel(%arg0: i32, %arg1: memref<1x16x8xf32, #tpu.memory_space<vmem>>, %arg2: memref<1x16x16xf32, #tpu.memory_space<vmem>>, %arg3: memref<1x16x1xf32, #tpu.memory_space<vmem>>, %arg4: memref<1x16x1xf32, #tpu.memory_space<vmem>>, %arg5: memref<8x32xf32, #tpu.memory_space<vmem>>, %arg6: memref<1x32xf32, #tpu.memory_space<vmem>>, %arg7: memref<32x32xf32, #tpu.memory_space<vmem>>, %arg8: memref<1x32xf32, #tpu.memory_space<vmem>>, %arg9: memref<1x64xf32, #tpu.memory_space<vmem>>, %arg10: memref<1x64xf32, #tpu.memory_space<vmem>>, %arg11: memref<64x15xf32, #tpu.memory_space<vmem>>, %arg12: memref<1x15xf32, #tpu.memory_space<vmem>>, %arg13: memref<15x15xf32, #tpu.memory_space<vmem>>, %arg14: memref<15x3xf32, #tpu.memory_space<vmem>>, %arg15: memref<128x32xf32, #tpu.memory_space<vmem>>, %arg16: memref<1x32xf32, #tpu.memory_space<vmem>>, %arg17: memref<32x2xf32, #tpu.memory_space<vmem>>, %arg18: memref<1x2xf32, #tpu.memory_space<vmem>>, %arg19: memref<1x1x2xf32, #tpu.memory_space<vmem>>, %arg20: memref<1x2x16x3xf32, #tpu.memory_space<vmem>>) attributes {dimension_semantics = [#tpu.dimension_semantics<parallel>], iteration_bounds = array<i64: 2>, scalar_prefetch = 0 : i64, scratch_operands = 0 : i64, tpu.core_type = #tpu.core_type<tc>, window_params = [{transform_indices = @transform_0, window_bounds = array<i64: 1, 16, 8>}, {transform_indices = @transform_1, window_bounds = array<i64: 1, 16, 16>}, {transform_indices = @transform_2, window_bounds = array<i64: 1, 16, 1>}, {transform_indices = @transform_3, window_bounds = array<i64: 1, 16, 1>}, {pipeline_mode = #tpu.pipeline_mode<synchronous>, transform_indices = @transform_4, window_bounds = array<i64: 8, 32>}, {pipeline_mode = #tpu.pipeline_mode<synchronous>, transform_indices = @transform_5, window_bounds = array<i64: 1, 32>}, {pipeline_mode = #tpu.pipeline_mode<synchronous>, transform_indices = @transform_6, window_bounds = array<i64: 32, 32>}, {pipeline_mode = #tpu.pipeline_mode<synchronous>, transform_indices = @transform_7, window_bounds = array<i64: 1, 32>}, {pipeline_mode = #tpu.pipeline_mode<synchronous>, transform_indices = @transform_8, window_bounds = array<i64: 1, 64>}, {pipeline_mode = #tpu.pipeline_mode<synchronous>, transform_indices = @transform_9, window_bounds = array<i64: 1, 64>}, {pipeline_mode = #tpu.pipeline_mode<synchronous>, transform_indices = @transform_10, window_bounds = array<i64: 64, 15>}, {pipeline_mode = #tpu.pipeline_mode<synchronous>, transform_indices = @transform_11, window_bounds = array<i64: 1, 15>}, {pipeline_mode = #tpu.pipeline_mode<synchronous>, transform_indices = @transform_12, window_bounds = array<i64: 15, 15>}, {pipeline_mode = #tpu.pipeline_mode<synchronous>, transform_indices = @transform_13, window_bounds = array<i64: 15, 3>}, {pipeline_mode = #tpu.pipeline_mode<synchronous>, transform_indices = @transform_14, window_bounds = array<i64: 128, 32>}, {pipeline_mode = #tpu.pipeline_mode<synchronous>, transform_indices = @transform_15, window_bounds = array<i64: 1, 32>}, {pipeline_mode = #tpu.pipeline_mode<synchronous>, transform_indices = @transform_16, window_bounds = array<i64: 32, 2>}, {pipeline_mode = #tpu.pipeline_mode<synchronous>, transform_indices = @transform_17, window_bounds = array<i64: 1, 2>}, {transform_indices = @transform_18, window_bounds = array<i64: 1, 1, 2>}, {transform_indices = @transform_19, window_bounds = array<i64: 1, 2, 16, 3>}]} {
    %c0 = arith.constant 0 : index
    %c0_0 = arith.constant 0 : index
    %c0_1 = arith.constant 0 : index
    %0 = vector.load %arg1[%c0, %c0_0, %c0_1] : memref<1x16x8xf32, #tpu.memory_space<vmem>>, vector<1x16x8xf32>
    %1 = vector.shape_cast %0 : vector<1x16x8xf32> to vector<16x8xf32>
    %c0_2 = arith.constant 0 : index
    %c0_3 = arith.constant 0 : index
    %c0_4 = arith.constant 0 : index
    %2 = vector.load %arg2[%c0_2, %c0_3, %c0_4] : memref<1x16x16xf32, #tpu.memory_space<vmem>>, vector<1x16x16xf32>
    %3 = vector.shape_cast %2 : vector<1x16x16xf32> to vector<16x16xf32>
    %c0_5 = arith.constant 0 : index
    %c0_6 = arith.constant 0 : index
    %c0_7 = arith.constant 0 : index
    %4 = vector.load %arg3[%c0_5, %c0_6, %c0_7] : memref<1x16x1xf32, #tpu.memory_space<vmem>>, vector<1x16x1xf32>
    %5 = vector.shape_cast %4 : vector<1x16x1xf32> to vector<16x1xf32>
    %c0_8 = arith.constant 0 : index
    %c0_9 = arith.constant 0 : index
    %c0_10 = arith.constant 0 : index
    %6 = vector.load %arg4[%c0_8, %c0_9, %c0_10] : memref<1x16x1xf32, #tpu.memory_space<vmem>>, vector<1x16x1xf32>
    %7 = vector.shape_cast %6 : vector<1x16x1xf32> to vector<16x1xf32>
    %c0_11 = arith.constant 0 : index
    %c0_12 = arith.constant 0 : index
    %8 = vector.load %arg5[%c0_11, %c0_12] : memref<8x32xf32, #tpu.memory_space<vmem>>, vector<8x32xf32>
    %cst = arith.constant dense<0.000000e+00> : vector<16x32xf32>
    %9 = tpu.matmul %1, %8, %cst {dimension_numbers = #tpu.dot_dimension_numbers<[1], [0], [0], [1], [0, 0, 1, 1], [], []>} : vector<16x8xf32>, vector<8x32xf32>, vector<16x32xf32> -> vector<16x32xf32>
    %cst_13 = arith.constant dense<0.000000e+00> : vector<16x32xf32>
    %10 = tpu.matmul %3, %9, %cst_13 {dimension_numbers = #tpu.dot_dimension_numbers<[1], [0], [0], [1], [0, 0, 1, 1], [], []>} : vector<16x16xf32>, vector<16x32xf32>, vector<16x32xf32> -> vector<16x32xf32>
    %c0_14 = arith.constant 0 : index
    %c0_15 = arith.constant 0 : index
    %11 = vector.load %arg6[%c0_14, %c0_15] : memref<1x32xf32, #tpu.memory_space<vmem>>, vector<1x32xf32>
    %12 = vector.broadcast %11 : vector<1x32xf32> to vector<16x32xf32>
    %13 = arith.addf %10, %12 : vector<16x32xf32>
    %cst_16 = arith.constant 0.000000e+00 : f32
    %14 = vector.broadcast %cst_16 : f32 to vector<16x32xf32>
    %15 = arith.maximumf %13, %14 : vector<16x32xf32>
    %16 = vector.broadcast %5 : vector<16x1xf32> to vector<16x32xf32>
    %17 = arith.mulf %15, %16 : vector<16x32xf32>
    %c0_17 = arith.constant 0 : index
    %c0_18 = arith.constant 0 : index
    %18 = vector.load %arg7[%c0_17, %c0_18] : memref<32x32xf32, #tpu.memory_space<vmem>>, vector<32x32xf32>
    %cst_19 = arith.constant dense<0.000000e+00> : vector<16x32xf32>
    %19 = tpu.matmul %17, %18, %cst_19 {dimension_numbers = #tpu.dot_dimension_numbers<[1], [0], [0], [1], [0, 0, 1, 1], [], []>} : vector<16x32xf32>, vector<32x32xf32>, vector<16x32xf32> -> vector<16x32xf32>
    %cst_20 = arith.constant dense<0.000000e+00> : vector<16x32xf32>
    %20 = tpu.matmul %3, %19, %cst_20 {dimension_numbers = #tpu.dot_dimension_numbers<[1], [0], [0], [1], [0, 0, 1, 1], [], []>} : vector<16x16xf32>, vector<16x32xf32>, vector<16x32xf32> -> vector<16x32xf32>
    %c0_21 = arith.constant 0 : index
    %c0_22 = arith.constant 0 : index
    %21 = vector.load %arg8[%c0_21, %c0_22] : memref<1x32xf32, #tpu.memory_space<vmem>>, vector<1x32xf32>
    %22 = vector.broadcast %21 : vector<1x32xf32> to vector<16x32xf32>
    %23 = arith.addf %20, %22 : vector<16x32xf32>
    %cst_23 = arith.constant 0.000000e+00 : f32
    %24 = vector.broadcast %cst_23 : f32 to vector<16x32xf32>
    %25 = arith.maximumf %23, %24 : vector<16x32xf32>
    %26 = vector.broadcast %5 : vector<16x1xf32> to vector<16x32xf32>
    %27 = arith.mulf %25, %26 : vector<16x32xf32>
    %28 = tpu.concatenate %17, %27 in 1 : vector<16x32xf32>, vector<16x32xf32> -> vector<16x64xf32>
    %c0_24 = arith.constant 0 : index
    %c0_25 = arith.constant 0 : index
    %29 = vector.load %arg9[%c0_24, %c0_25] : memref<1x64xf32, #tpu.memory_space<vmem>>, vector<1x64xf32>
    %30 = vector.broadcast %29 : vector<1x64xf32> to vector<16x64xf32>
    %31 = arith.mulf %28, %30 : vector<16x64xf32>
    %c0_26 = arith.constant 0 : index
    %c0_27 = arith.constant 0 : index
    %32 = vector.load %arg10[%c0_26, %c0_27] : memref<1x64xf32, #tpu.memory_space<vmem>>, vector<1x64xf32>
    %33 = vector.broadcast %32 : vector<1x64xf32> to vector<16x64xf32>
    %34 = arith.addf %31, %33 : vector<16x64xf32>
    %35 = vector.broadcast %5 : vector<16x1xf32> to vector<16x64xf32>
    %36 = arith.mulf %34, %35 : vector<16x64xf32>
    %c0_28 = arith.constant 0 : index
    %c0_29 = arith.constant 0 : index
    %37 = vector.load %arg11[%c0_28, %c0_29] : memref<64x15xf32, #tpu.memory_space<vmem>>, vector<64x15xf32>
    %cst_30 = arith.constant dense<0.000000e+00> : vector<16x15xf32>
    %38 = tpu.matmul %36, %37, %cst_30 {dimension_numbers = #tpu.dot_dimension_numbers<[1], [0], [0], [1], [0, 0, 1, 1], [], []>} : vector<16x64xf32>, vector<64x15xf32>, vector<16x15xf32> -> vector<16x15xf32>
    %39 = arith.mulf %36, %36 : vector<16x64xf32>
    %cst_31 = arith.constant dense<0.000000e+00> : vector<16xf32>
    %40 = vector.multi_reduction <add>, %39, %cst_31 [1] : vector<16x64xf32> to vector<16xf32>
    %41 = vector.shape_cast %40 : vector<16xf32> to vector<16x1xf32>
    %c0_32 = arith.constant 0 : index
    %c0_33 = arith.constant 0 : index
    %42 = vector.load %arg12[%c0_32, %c0_33] : memref<1x15xf32, #tpu.memory_space<vmem>>, vector<1x15xf32>
    %43 = vector.broadcast %41 : vector<16x1xf32> to vector<16x15xf32>
    %44 = vector.broadcast %42 : vector<1x15xf32> to vector<16x15xf32>
    %45 = arith.addf %43, %44 : vector<16x15xf32>
    %cst_34 = arith.constant 2.000000e+00 : f32
    %46 = vector.broadcast %cst_34 : f32 to vector<16x15xf32>
    %47 = arith.mulf %46, %38 : vector<16x15xf32>
    %48 = arith.subf %45, %47 : vector<16x15xf32>
    %cst_35 = arith.constant 1.000000e+00 : f32
    %49 = vector.broadcast %cst_35 : f32 to vector<16x15xf32>
    %50 = arith.addf %49, %48 : vector<16x15xf32>
    %cst_36 = arith.constant 1.000000e+00 : f32
    %51 = vector.broadcast %cst_36 : f32 to vector<16x15xf32>
    %52 = arith.divf %51, %50 : vector<16x15xf32>
    %c0_37 = arith.constant 0 : index
    %c0_38 = arith.constant 0 : index
    %53 = vector.load %arg13[%c0_37, %c0_38] : memref<15x15xf32, #tpu.memory_space<vmem>>, vector<15x15xf32>
    %cst_39 = arith.constant dense<0.000000e+00> : vector<16x15xf32>
    %54 = tpu.matmul %52, %53, %cst_39 {dimension_numbers = #tpu.dot_dimension_numbers<[1], [0], [0], [1], [0, 0, 1, 1], [], []>} : vector<16x15xf32>, vector<15x15xf32>, vector<16x15xf32> -> vector<16x15xf32>
    %55 = arith.divf %52, %54 : vector<16x15xf32>
    %c0_40 = arith.constant 0 : index
    %c0_41 = arith.constant 0 : index
    %56 = vector.load %arg14[%c0_40, %c0_41] : memref<15x3xf32, #tpu.memory_space<vmem>>, vector<15x3xf32>
    %cst_42 = arith.constant dense<0.000000e+00> : vector<16x3xf32>
    %57 = tpu.matmul %55, %56, %cst_42 {dimension_numbers = #tpu.dot_dimension_numbers<[1], [0], [0], [1], [0, 0, 1, 1], [], []>} : vector<16x15xf32>, vector<15x3xf32>, vector<16x3xf32> -> vector<16x3xf32>
    %58 = vector.broadcast %5 : vector<16x1xf32> to vector<16x3xf32>
    %59 = arith.mulf %57, %58 : vector<16x3xf32>
    %cst_43 = arith.constant dense<0.000000e+00> : vector<16x3xf32>
    %60 = tpu.matmul %3, %59, %cst_43 {dimension_numbers = #tpu.dot_dimension_numbers<[1], [0], [0], [1], [0, 0, 1, 1], [], []>} : vector<16x16xf32>, vector<16x3xf32>, vector<16x3xf32> -> vector<16x3xf32>
    %61 = vector.broadcast %7 : vector<16x1xf32> to vector<16x3xf32>
    %62 = arith.mulf %60, %61 : vector<16x3xf32>
    %cst_44 = arith.constant dense<0xFF800000> : vector<16xf32>
    %63 = vector.multi_reduction <maximumf>, %62, %cst_44 [1] : vector<16x3xf32> to vector<16xf32>
    %64 = vector.shape_cast %63 : vector<16xf32> to vector<16x1xf32>
    %65 = vector.broadcast %64 : vector<16x1xf32> to vector<16x3xf32>
    %66 = arith.subf %62, %65 : vector<16x3xf32>
    %67 = math.exp %66 : vector<16x3xf32>
    %cst_45 = arith.constant dense<0.000000e+00> : vector<16xf32>
    %68 = vector.multi_reduction <add>, %67, %cst_45 [1] : vector<16x3xf32> to vector<16xf32>
    %69 = vector.shape_cast %68 : vector<16xf32> to vector<16x1xf32>
    %70 = tpu.reciprocal %69 {approx = true} : vector<16x1xf32> -> vector<16x1xf32>
    %71 = vector.broadcast %70 : vector<16x1xf32> to vector<16x3xf32>
    %72 = arith.mulf %67, %71 : vector<16x3xf32>
    %73 = tpu.iota {dimensions = array<i32: 1>} : vector<16x3xi32>
    %cst_46 = arith.constant dense<0xFF800000> : vector<16xf32>
    %74 = vector.multi_reduction <maximumf>, %72, %cst_46 [1] : vector<16x3xf32> to vector<16xf32>
    %75 = vector.shape_cast %74 : vector<16xf32> to vector<16x1xf32>
    %76 = vector.broadcast %75 : vector<16x1xf32> to vector<16x3xf32>
    %77 = arith.cmpf oge, %72, %76 : vector<16x3xf32>
    %c3_i32 = arith.constant 3 : i32
    %78 = vector.broadcast %c3_i32 : i32 to vector<16x3xi32>
    %79 = arith.select %77, %73, %78 : vector<16x3xi1>, vector<16x3xi32>
    %cst_47 = arith.constant dense<2147483647> : vector<16xi32>
    %80 = vector.multi_reduction <minsi>, %79, %cst_47 [1] : vector<16x3xi32> to vector<16xi32>
    %81 = vector.shape_cast %80 : vector<16xi32> to vector<16x1xi32>
    %82 = vector.broadcast %81 : vector<16x1xi32> to vector<16x3xi32>
    %83 = arith.cmpi eq, %73, %82 : vector<16x3xi32>
    %84 = arith.extui %83 : vector<16x3xi1> to vector<16x3xi32>
    %85 = arith.sitofp %84 : vector<16x3xi32> to vector<16x3xf32>
    %86 = arith.mulf %72, %85 : vector<16x3xf32>
    %c0_48 = arith.constant 0 : index
    %c0_49 = arith.constant 0 : index
    %c0_50 = arith.constant 0 : index
    %c0_51 = arith.constant 0 : index
    %87 = vector.load %arg20[%c0_48, %c0_49, %c0_50, %c0_51] : memref<1x2x16x3xf32, #tpu.memory_space<vmem>>, vector<1x1x16x3xf32>
    %88 = vector.shape_cast %87 : vector<1x1x16x3xf32> to vector<16x3xf32>
    %89 = vector.shape_cast %86 : vector<16x3xf32> to vector<1x1x16x3xf32>
    tpu.vector_store %arg20[%c0_48, %c0_49, %c0_50, %c0_51], %89 {strides = array<i32>} : memref<1x2x16x3xf32, #tpu.memory_space<vmem>>, vector<1x1x16x3xf32>,
    %c0_52 = arith.constant 0 : index
    %c1 = arith.constant 1 : index
    %c0_53 = arith.constant 0 : index
    %c0_54 = arith.constant 0 : index
    %90 = vector.load %arg20[%c0_52, %c1, %c0_53, %c0_54] : memref<1x2x16x3xf32, #tpu.memory_space<vmem>>, vector<1x1x16x3xf32>
    %91 = vector.shape_cast %90 : vector<1x1x16x3xf32> to vector<16x3xf32>
    %92 = vector.shape_cast %62 : vector<16x3xf32> to vector<1x1x16x3xf32>
    tpu.vector_store %arg20[%c0_52, %c1, %c0_53, %c0_54], %92 {strides = array<i32>} : memref<1x2x16x3xf32, #tpu.memory_space<vmem>>, vector<1x1x16x3xf32>,
    %cst_55 = arith.constant dense<0.000000e+00> : vector<3x64xf32>
    %93 = tpu.matmul %86, %36, %cst_55 {dimension_numbers = #tpu.dot_dimension_numbers<[0], [0], [1], [1], [0, 1, 1, 1], [], []>} : vector<16x3xf32>, vector<16x64xf32>, vector<3x64xf32> -> vector<3x64xf32>
    %94 = vector.extract_strided_slice %93 {offsets = [0, 0], sizes = [1, 64], strides = [1, 1]} : vector<3x64xf32> to vector<1x64xf32>
    %95 = vector.extract_strided_slice %93 {offsets = [1, 0], sizes = [1, 64], strides = [1, 1]} : vector<3x64xf32> to vector<1x64xf32>
    %96 = tpu.concatenate %94, %95 in 1 : vector<1x64xf32>, vector<1x64xf32> -> vector<1x128xf32>
    %c0_56 = arith.constant 0 : index
    %c0_57 = arith.constant 0 : index
    %97 = vector.load %arg15[%c0_56, %c0_57] : memref<128x32xf32, #tpu.memory_space<vmem>>, vector<128x32xf32>
    %cst_58 = arith.constant dense<0.000000e+00> : vector<1x32xf32>
    %98 = tpu.matmul %96, %97, %cst_58 {dimension_numbers = #tpu.dot_dimension_numbers<[1], [0], [0], [1], [0, 0, 1, 1], [], []>} : vector<1x128xf32>, vector<128x32xf32>, vector<1x32xf32> -> vector<1x32xf32>
    %c0_59 = arith.constant 0 : index
    %c0_60 = arith.constant 0 : index
    %99 = vector.load %arg16[%c0_59, %c0_60] : memref<1x32xf32, #tpu.memory_space<vmem>>, vector<1x32xf32>
    %100 = arith.addf %98, %99 : vector<1x32xf32>
    %cst_61 = arith.constant 0.000000e+00 : f32
    %101 = vector.broadcast %cst_61 : f32 to vector<1x32xf32>
    %102 = arith.maximumf %100, %101 : vector<1x32xf32>
    %c0_62 = arith.constant 0 : index
    %c0_63 = arith.constant 0 : index
    %103 = vector.load %arg17[%c0_62, %c0_63] : memref<32x2xf32, #tpu.memory_space<vmem>>, vector<32x2xf32>
    %cst_64 = arith.constant dense<0.000000e+00> : vector<1x2xf32>
    %104 = tpu.matmul %102, %103, %cst_64 {dimension_numbers = #tpu.dot_dimension_numbers<[1], [0], [0], [1], [0, 0, 1, 1], [], []>} : vector<1x32xf32>, vector<32x2xf32>, vector<1x2xf32> -> vector<1x2xf32>
    %c0_65 = arith.constant 0 : index
    %c0_66 = arith.constant 0 : index
    %105 = vector.load %arg18[%c0_65, %c0_66] : memref<1x2xf32, #tpu.memory_space<vmem>>, vector<1x2xf32>
    %106 = arith.addf %104, %105 : vector<1x2xf32>
    %cst_67 = arith.constant dense<0xFF800000> : vector<1xf32>
    %107 = vector.multi_reduction <maximumf>, %106, %cst_67 [1] : vector<1x2xf32> to vector<1xf32>
    %108 = vector.shape_cast %107 : vector<1xf32> to vector<1x1xf32>
    %109 = vector.broadcast %108 : vector<1x1xf32> to vector<1x2xf32>
    %110 = arith.subf %106, %109 : vector<1x2xf32>
    %111 = math.exp %110 : vector<1x2xf32>
    %cst_68 = arith.constant dense<0.000000e+00> : vector<1xf32>
    %112 = vector.multi_reduction <add>, %111, %cst_68 [1] : vector<1x2xf32> to vector<1xf32>
    %113 = vector.shape_cast %112 : vector<1xf32> to vector<1x1xf32>
    %114 = math.log %113 : vector<1x1xf32>
    %115 = vector.broadcast %114 : vector<1x1xf32> to vector<1x2xf32>
    %116 = arith.subf %110, %115 : vector<1x2xf32>
    %c0_69 = arith.constant 0 : index
    %c0_70 = arith.constant 0 : index
    %c0_71 = arith.constant 0 : index
    %117 = vector.load %arg19[%c0_69, %c0_70, %c0_71] : memref<1x1x2xf32, #tpu.memory_space<vmem>>, vector<1x1x2xf32>
    %118 = vector.shape_cast %117 : vector<1x1x2xf32> to vector<1x2xf32>
    %119 = vector.shape_cast %116 : vector<1x2xf32> to vector<1x1x2xf32>
    tpu.vector_store %arg19[%c0_69, %c0_70, %c0_71], %119 {strides = array<i32>} : memref<1x1x2xf32, #tpu.memory_space<vmem>>, vector<1x1x2xf32>,
    return
  }
  func.func @transform_0(%arg0: i32) -> (i32, i32, i32) {
    %c0_i32 = arith.constant 0 : i32
    %c0_i32_0 = arith.constant 0 : i32
    %c0_i32_1 = arith.constant 0 : i32
    return %arg0, %c0_i32, %c0_i32_0 : i32, i32, i32
  }
  func.func @transform_1(%arg0: i32) -> (i32, i32, i32) {
    %c0_i32 = arith.constant 0 : i32
    %c0_i32_0 = arith.constant 0 : i32
    %c0_i32_1 = arith.constant 0 : i32
    return %arg0, %c0_i32, %c0_i32_0 : i32, i32, i32
  }
  func.func @transform_2(%arg0: i32) -> (i32, i32, i32) {
    %c0_i32 = arith.constant 0 : i32
    %c0_i32_0 = arith.constant 0 : i32
    %c0_i32_1 = arith.constant 0 : i32
    return %arg0, %c0_i32, %c0_i32_0 : i32, i32, i32
  }
  func.func @transform_3(%arg0: i32) -> (i32, i32, i32) {
    %c0_i32 = arith.constant 0 : i32
    %c0_i32_0 = arith.constant 0 : i32
    %c0_i32_1 = arith.constant 0 : i32
    return %arg0, %c0_i32, %c0_i32_0 : i32, i32, i32
  }
  func.func @transform_4(%arg0: i32) -> (i32, i32) {
    %c0_i32 = arith.constant 0 : i32
    %c0_i32_0 = arith.constant 0 : i32
    %c0_i32_1 = arith.constant 0 : i32
    return %c0_i32, %c0_i32_0 : i32, i32
  }
  func.func @transform_5(%arg0: i32) -> (i32, i32) {
    %c0_i32 = arith.constant 0 : i32
    %c0_i32_0 = arith.constant 0 : i32
    %c0_i32_1 = arith.constant 0 : i32
    return %c0_i32, %c0_i32_0 : i32, i32
  }
  func.func @transform_6(%arg0: i32) -> (i32, i32) {
    %c0_i32 = arith.constant 0 : i32
    %c0_i32_0 = arith.constant 0 : i32
    %c0_i32_1 = arith.constant 0 : i32
    return %c0_i32, %c0_i32_0 : i32, i32
  }
  func.func @transform_7(%arg0: i32) -> (i32, i32) {
    %c0_i32 = arith.constant 0 : i32
    %c0_i32_0 = arith.constant 0 : i32
    %c0_i32_1 = arith.constant 0 : i32
    return %c0_i32, %c0_i32_0 : i32, i32
  }
  func.func @transform_8(%arg0: i32) -> (i32, i32) {
    %c0_i32 = arith.constant 0 : i32
    %c0_i32_0 = arith.constant 0 : i32
    %c0_i32_1 = arith.constant 0 : i32
    return %c0_i32, %c0_i32_0 : i32, i32
  }
  func.func @transform_9(%arg0: i32) -> (i32, i32) {
    %c0_i32 = arith.constant 0 : i32
    %c0_i32_0 = arith.constant 0 : i32
    %c0_i32_1 = arith.constant 0 : i32
    return %c0_i32, %c0_i32_0 : i32, i32
  }
  func.func @transform_10(%arg0: i32) -> (i32, i32) {
    %c0_i32 = arith.constant 0 : i32
    %c0_i32_0 = arith.constant 0 : i32
    %c0_i32_1 = arith.constant 0 : i32
    return %c0_i32, %c0_i32_0 : i32, i32
  }
  func.func @transform_11(%arg0: i32) -> (i32, i32) {
    %c0_i32 = arith.constant 0 : i32
    %c0_i32_0 = arith.constant 0 : i32
    %c0_i32_1 = arith.constant 0 : i32
    return %c0_i32, %c0_i32_0 : i32, i32
  }
  func.func @transform_12(%arg0: i32) -> (i32, i32) {
    %c0_i32 = arith.constant 0 : i32
    %c0_i32_0 = arith.constant 0 : i32
    %c0_i32_1 = arith.constant 0 : i32
    return %c0_i32, %c0_i32_0 : i32, i32
  }
  func.func @transform_13(%arg0: i32) -> (i32, i32) {
    %c0_i32 = arith.constant 0 : i32
    %c0_i32_0 = arith.constant 0 : i32
    %c0_i32_1 = arith.constant 0 : i32
    return %c0_i32, %c0_i32_0 : i32, i32
  }
  func.func @transform_14(%arg0: i32) -> (i32, i32) {
    %c0_i32 = arith.constant 0 : i32
    %c0_i32_0 = arith.constant 0 : i32
    %c0_i32_1 = arith.constant 0 : i32
    return %c0_i32, %c0_i32_0 : i32, i32
  }
  func.func @transform_15(%arg0: i32) -> (i32, i32) {
    %c0_i32 = arith.constant 0 : i32
    %c0_i32_0 = arith.constant 0 : i32
    %c0_i32_1 = arith.constant 0 : i32
    return %c0_i32, %c0_i32_0 : i32, i32
  }
  func.func @transform_16(%arg0: i32) -> (i32, i32) {
    %c0_i32 = arith.constant 0 : i32
    %c0_i32_0 = arith.constant 0 : i32
    %c0_i32_1 = arith.constant 0 : i32
    return %c0_i32, %c0_i32_0 : i32, i32
  }
  func.func @transform_17(%arg0: i32) -> (i32, i32) {
    %c0_i32 = arith.constant 0 : i32
    %c0_i32_0 = arith.constant 0 : i32
    %c0_i32_1 = arith.constant 0 : i32
    return %c0_i32, %c0_i32_0 : i32, i32
  }
  func.func @transform_18(%arg0: i32) -> (i32, i32, i32) {
    %c0_i32 = arith.constant 0 : i32
    %c0_i32_0 = arith.constant 0 : i32
    %c0_i32_1 = arith.constant 0 : i32
    return %arg0, %c0_i32, %c0_i32_0 : i32, i32, i32
  }
  func.func @transform_19(%arg0: i32) -> (i32, i32, i32, i32) {
    %c0_i32 = arith.constant 0 : i32
    %c0_i32_0 = arith.constant 0 : i32
    %c0_i32_1 = arith.constant 0 : i32
    %c0_i32_2 = arith.constant 0 : i32
    return %arg0, %c0_i32, %c0_i32_0, %c0_i32_1 : i32, i32, i32, i32
  }
}

</mosaic_0001>

<bundles_post_ra>
// kernel: imem_pool_forward.1
= control target key start
LH: loop header
LB: loop body
LE: loop exit
PB: predicated region body
PF: predicated region fallthrough
CT: control target
= control target key end

     0   :  { %s2881_s0 = inlined_call_operand.vmem [shape: f32[2,16,8], index: 0, kind: input, shape index: {}]   ;;  %s2882_s1 = inlined_call_operand.vmem [shape: f32[2,16,16], index: 1, kind: input, shape index: {}]   ;;  %s2883_s2 = inlined_call_operand.vmem [shape: f32[2,16,1], index: 2, kind: input, shape index: {}]   ;;  %s2884_s3 = inlined_call_operand.vmem [shape: f32[2,16,1], index: 3, kind: input, shape index: {}]   ;;  %s2885_s4 = inlined_call_operand.vmem [shape: f32[8,32], index: 4, kind: input, shape index: {}]   ;;  %s2886_s5 = inlined_call_operand.vmem [shape: f32[1,32], index: 5, kind: input, shape index: {}]   ;;  %s2887_s6 = inlined_call_operand.vmem [shape: f32[32,32], index: 6, kind: input, shape index: {}]   ;;  %s2888_s7 = inlined_call_operand.vmem [shape: f32[1,32], index: 7, kind: input, shape index: {}]   ;;  %s2889_s8 = inlined_call_operand.vmem [shape: f32[1,64], index: 8, kind: input, shape index: {}]   ;;  %s2890_s9 = inlined_call_operand.vmem [shape: f32[1,64], index: 9, kind: input, shape index: {}]   ;;  %s2891_s10 = inlined_call_operand.vmem [shape: f32[64,15], index: 10, kind: input, shape index: {}]   ;;  %s2892_s11 = inlined_call_operand.vmem [shape: f32[1,15], index: 11, kind: input, shape index: {}]   ;;  %s2893_s12 = inlined_call_operand.vmem [shape: f32[15,15], index: 12, kind: input, shape index: {}]   ;;  %s2894_s13 = inlined_call_operand.vmem [shape: f32[15,3], index: 13, kind: input, shape index: {}]   ;;  %s2895_s14 = inlined_call_operand.vmem [shape: f32[128,32], index: 14, kind: input, shape index: {}]   ;;  %s2896_s15 = inlined_call_operand.vmem [shape: f32[1,32], index: 15, kind: input, shape index: {}]   ;;  %s2897_s16 = inlined_call_operand.vmem [shape: f32[32,2], index: 16, kind: input, shape index: {}]   ;;  %s2898_s17 = inlined_call_operand.vmem [shape: f32[1,2], index: 17, kind: input, shape index: {}]   ;;  %s2899_s18 = inlined_call_operand.hbm [shape: f32[2,1,2], index: 18, kind: output, shape index: {0}]   ;;  %s2900_s19 = inlined_call_operand.vmem [shape: f32[2,2,16,3], index: 19, kind: output, shape index: {1}]  }
   0x1   :  { %2908 = sst [smem:[#allocation11_spill]] %s2881_s0 }
   0x2   :  { %2909 = sst [smem:[#allocation12_spill]] %s2882_s1 }
   0x3   :  { %2910 = sst [smem:[#allocation13_spill]] %s2883_s2 }
   0x4   :  { %2911 = sst [smem:[#allocation14_spill]] %s2884_s3 }
   0x5   :  { %2912 = sst [smem:[#allocation15_spill]] %s2885_s4 }
   0x6   :  { %2913 = sst [smem:[#allocation16_spill]] %s2899_s18 }
   0x7   :  { %25 = vsyncpa [#allocation3], 0 }
   0x8   :  { %27 = vsyncpa [#allocation3 + $0x1], 0  ;;  %s2518_s0 = smov 0   ;;  %s2520_s30 = smov 0  }
   0x9   :  { %s2522_s20 = smov 0   ;;  %s2524_s21 = smov 0  }
   0xa LB: > { %2914 = sst [smem:[#allocation5_spill]] %s2396_s0  ;;  %s2539_s1 = sadd.s32 4294967295, %s2408_s21   ;;  %s2408_s21 = sphi %s2524_s21, %s2933_s21   ;;  %s2404_s20 = sphi %s2522_s20, %s2938_s20   ;;  %s2400_s30 = sphi %s2520_s30, %s2937_s30   ;;  %s2396_s0 = sphi %s2518_s0, %s2936_s0  }
   0xb   : > { %2915 = sst [smem:[#allocation6_spill]] %s2404_s20  ;;  %s1959_s22 = sadd.s32 4294967294, %s2408_s21  }
   0xc   : > { %2916 = sst [smem:[#allocation7_spill]] %s2408_s21  ;;  %s2543_s2 = sadd.s32 1, %s2408_s21  }
   0xd   : > { %2917 = sst [smem:[#allocation8_spill]] %s2543_s2  ;;  %s438_s23 = sadd.s32 1, %s2404_s20 }
   0xe   : > { %s435_s24 = ssub.s32 %s2408_s21, %s2543_s2  ;;  %p448_p0 = scmp.ne.s32.totalorder %s2404_s20, %s2400_s30 }
   0xf   : > { %p436_p1 = scmp.eq.s32.totalorder %s435_s24, 0  ;;  %p449_p2 = scmp.eq.s32.totalorder %s2539_s1, 1 }
  0x10   : > { %p454_p3 = scmp.ne.s32.totalorder %s2400_s30, %s2396_s0  ;;  %p455_p4 = scmp.eq.s32.totalorder %s1959_s22, 1 }
  0x11   : > { %s2554_s25 = scalar_select %p436_p1, %s2404_s20, %s438_s23  }
  0x12   : > { %p2556_p5 = por %p449_p2, %p448_p0  ;;  %p2560_p6 = por %p455_p4, %p454_p3 }
  0x13   : > { %2918 = sst [smem:[#allocation9_spill]] %s2554_s25  ;;  %p1962_p7 = scmp.ge.s32.totalorder %s2408_s21, 1 }
  0x14   : > { %s2920_s26 = scalar_select %p2560_p6, 1, 0 }
  0x15   : > { %p573_p8 = scmp.lt.s32.totalorder %s2408_s21, 3 }
  0x16   : > { %2921 = sst [smem:[#allocation10_spill]] %s2920_s26 }
  0x17   : > { %p574_p9 = pnand %p1962_p7, %p573_p8 }
  0x18   : > { %s2922_s4 = sld [smem:[#allocation15_spill]] (!%p574_p9)  ;;  %p648_p10 = scmp.lt.s32.totalorder (!%p574_p9), %s2539_s1, 1  ;;  %vm682_vm0 = vcmask (!%p574_p9), 64512   ;;  %vm771_vm1 = vcmask (!%p574_p9), 130048   ;;  %v2410_v4 = vmov (!%p574_p9), 0   ;;  %v867_v11 = vld [vmem:[%s2887_s6] sm:$0xff] (!%p574_p9) }
  0x19   : > { %577 = sbr.rel (%p574_p9) target bundleno = 3912 (0xf48), region = 92  ;;  %s2923_s25 = sld [smem:[#allocation11_spill]] (!%p574_p9)  ;;  %2324 = vset.pattern.permute.xlu0 (!%p574_p9), %v2410_v4  ;;  %2325 = vset.pattern.permute.xlu1 (!%p574_p9), %v2410_v4  ;;  %v868_v12 = vld [vmem:[%s2887_s6 + $0x8] sm:$0xff] (!%p574_p9)  ;;  %v869_v14 = vld [vmem:[%s2887_s6 + $0x10] sm:$0xff] (!%p574_p9)  ;;  %v870_v15 = vld [vmem:[%s2887_s6 + $0x18] sm:$0xff] (!%p574_p9)  ;;  %vm871_vm2 = vcmask (!%p574_p9), 261120  }
  0x1a   : > { %s2925_s21 = sld [smem:[#allocation13_spill]] (!%p574_p9)  ;;  %v2201_v13 = vpack.c.bf16 (!%p574_p9), %v868_v12, %v867_v11  ;;  %v2205_v16 = vpack.c.bf16 (!%p574_p9), %v870_v15, %v869_v14  ;;  %v1975_v17 = vld [vmem:[%s2886_s5] ss:$0 sm:$0xff] (!%p574_p9)  ;;  %v1070_v32 = vld [vmem:[%s2891_s10 + $0x8] sm:$0xff] (!%p574_p9)  ;;  %v1071_v33 = vld [vmem:[%s2891_s10 + $0x10] sm:$0xff] (!%p574_p9)  ;;  %vm1077_vm3 = vcmask (!%p574_p9), 523264  }
  0x1b   : > { %v1069_v31 = vld [vmem:[%s2891_s10] sm:$0xff] (!%p574_p9)  ;;  %v1072_v35 = vld [vmem:[%s2891_s10 + $0x18] sm:$0xff] (!%p574_p9)  ;;  %v1074_v38 = vld [vmem:[%s2891_s10 + $0x28] sm:$0xff] (!%p574_p9)  ;;  %s2926_s28 = sld [smem:[#allocation14_spill]] (!%p574_p9)  ;;  %vm1195_vm4 = vcmask (!%p574_p9), 1046528   ;;  %vm2412_vm5 = vmmov (!%p574_p9), 1  }
  0x1c   : > { %v2213_v34 = vpack.c.bf16 (!%p574_p9), %v1070_v32, %v1069_v31  ;;  %v2217_v36 = vpack.c.bf16 (!%p574_p9), %v1072_v35, %v1071_v33  ;;  %v1073_v37 = vld [vmem:[%s2891_s10 + $0x20] sm:$0xff] (!%p574_p9)  ;;  %v1075_v41 = vld [vmem:[%s2891_s10 + $0x30] sm:$0xff] (!%p574_p9)  ;;  %v1076_v42 = vld [vmem:[%s2891_s10 + $0x38] sm:$0xff] (!%p574_p9)  ;;  %vm1188_vm7 = vcmask (!%p574_p9), 121856   ;;  %vm1453_vm8 = vcmask (!%p574_p9), 23552   ;;  %s2416_s23 = smov (!%p574_p9), 64  }
  0x1d   : > { %v2221_v39 = vpack.c.bf16 (!%p574_p9), %v1074_v38, %v1073_v37  ;;  %v1980_v40 = vld [vmem:[%s2888_s7] ss:$0 sm:$0xff] (!%p574_p9)  ;;  %v2225_v44 = vpack.c.bf16 (!%p574_p9), %v1076_v42, %v1075_v41  ;;  %vm2691_vm6 = vmpackc.low (!%p574_p9), %vm1195_vm4, %vm2412_vm5  ;;  %v2413_v38 = vmov (!%p574_p9), 0.0|0.0   ;;  %vm2414_vm13 = vmmov (!%p574_p9), 0   ;;  %s2929_s24 = sld [smem:[#allocation16_spill]] (!%p574_p9) }
  0x1e   : > { %v681_v0 = vld [vmem:[%s2922_s4] sm:$0xff] (!%p574_p9)  ;;  %s2924_s4 = sld [smem:[#allocation12_spill]] (!%p574_p9) }
  0x1f   : > { %2074 = vmatprep.subr.mxu0 (!%p574_p9), %v681_v0  ;;  %v1983_v52 = vld [vmem:[%s2889_s8] ss:$0 sm:$0xff] (!%p574_p9) }
  0x20   : > { %2075 = vmatpush3.msra.mxu0 %v681_v0  ;;  %s2571_s29 = scalar_select %p648_p10, %s2539_s1, 1  ;;  %v1984_v54 = vld [vmem:[%s2890_s9] ss:$0 sm:$0xff] }
  0x21   : > { %2202 = vmatprep.subr.bf16.mxu0 %v2201_v13 }
  0x22   : > { %s2574_s22 = sshll.u32 %s2571_s29, 4  ;;  %s2009_s27 = sshll.u32 %s2571_s29, 5 }
  0x23   : > { %s652_s20 = scalar_lea.vmem %s2923_s25, %s2574_s22  ;;  %s662_s18 = scalar_lea.vmem %s2925_s21, %s2574_s22 }
  0x24   : > { %v673_v1 = vld [vmem:[%s652_s20] sm:$0xff]  ;;  %v674_v2 = vld [vmem:[%s652_s20 + $0x8] sm:$0xff]  ;;  %s657_s2 = scalar_lea.vmem %s2924_s4, %s2574_s22  ;;  %s2411_s21 = smov 32  }
  0x25   : > { %2076 = vmatprep.mubr.msk.f32.mxu0 %vm682_vm0, %v673_v1  ;;  %v2584_v3 = vld [vmem:[%s657_s2] sm:$0xff]  ;;  %v678_v6 = vld [vmem:[%s662_s18 + $0x8] sm:$0xff]  ;;  %s2682_s4 = scalar_lea.vmem %s2926_s28, %s2574_s22  ;;  %s2733_s0 = scalar_lea.vmem %s2900_s19, %s2009_s27 }
  0x26   : > { %2077 = vmatmul.mubr.msk.f32.vlgmr.msra.gmra.mrb[0].mxu0 %vm682_vm0, %v674_v2  ;;  %2083 = vmatprep.mubr.msk.f32.mxu1 %vm771_vm1, %v2584_v3  ;;  %v677_v5 = vld [vmem:[%s662_s18] sm:$0xff]  ;;  %v2592_v10 = vld [vmem:[%s657_s2 + $0x8] sm:$0xff]  ;;  %vm1808_vm0 = vcmask 8192   ;;  %s2002_s22 = sshll.u32 %s2539_s1, 4  ;;  %s2417_s1 = smov [#allocation2]  }
  0x27   : > { %857 = vperm.xlu0 %2324, %v677_v5   ;;  %2204 = vmatpush3.bf16.msra.mxu0 %v2201_v13  ;;  %v1987_v13 = vld [vmem:[%s2892_s11] ss:$0 sm:$0xff]  ;;  %s2838_s27 = scalar_lea.hbm %s2929_s24, %s2002_s22 }
  0x28   : > { %2206 = vmatprep.subr.bf16.mxu0 %v2205_v16 }
  0x2b   : > { %862 = vperm.xlu0 %2324, %v678_v6   ;;  %2208 = vmatpush3.bf16.msra.mxu0 %v2205_v16  ;;  %v679_v6 = vld [vmem:[%s2682_s4] sm:$0xff] }
  0x2c   : > { %2214 = vmatprep.subr.bf16.mxu0 %v2213_v34 }
  0xa6   : > { %v2613_v18 = vpop.permute.xlu0 %857 }
  0xaa   : > { %v2616_v26 = vpop.permute.xlu0 %862 }
  0xf9   : > { %v2078_v7 = vpop.f32.mrb[0].mxu0 }
  0xfa   : > { %v755_v8 = vpop.f32.mrb[1].mxu0 }
  0xfb   : > { %v2197_v9 = vpack.c.bf16 %v2078_v7, %v755_v8  ;;  %v1186_v7 = vld [vmem:[%s2893_s12] sm:$0xff]  ;;  %v1187_v8 = vld [vmem:[%s2893_s12 + $0x8] sm:$0x7f] }
  0xfd   : > { %2198 = vmatprep.subr.bf16.mxu1 %v2197_v9 }
  0xfe   : > { %2200 = vmatpush3.bf16.msra.mxu1 %v2197_v9  ;;  %v2229_v9 = vpack.c.bf16 %v1187_v8, %v1186_v7 }
 0x101   : > { %2084 = vmatmul.mubr.msk.f32.vlgmr.msra.gmra.mrb[0].mxu1 %vm771_vm1, %v2592_v10 }
 0x102   : > { %2101 = vmatprep.mubr.msk.f32.mxu1 %vm771_vm1, %v2584_v3 }
 0x1d4   : > { %v2085_v19 = vpop.f32.mrb[0].mxu1 }
 0x1d5   : > { %v850_v20 = vadd.f32 %v2085_v19, %v1975_v17  ;;  %v844_v21 = vpop.f32.mrb[1].mxu1 }
 0x1d6   : > { %v845_v22 = vadd.f32 %v1975_v17, %v844_v21 }
 0x1d7   : > { %v854_v23 = vmax.f32 %v850_v20, 0.0 }
 0x1d8   : > { %v853_v24 = vmax.f32 %v845_v22, 0.0 }
 0x1d9   : > { %v866_v27 = vmul.f32 %v2616_v26, %v854_v23 }
 0x1da   : > { %v865_v25 = vmul.f32 %v2613_v18, %v853_v24 }
 0x1dc   : > { %2094 = vmatprep.mubr.msk.f32.mxu0 %vm871_vm2, %v865_v25 }
 0x1dd   : > { %2095 = vmatmul.mubr.msk.f32.vlgmr.msra.gmra.mrb[2].mxu0 %vm871_vm2, %v866_v27 }
 0x1de   : > { %2216 = vmatpush3.bf16.msra.mxu0 %v2213_v34 }
 0x1df   : > { %2218 = vmatprep.subr.bf16.mxu0 %v2217_v36 }
 0x1e2   : > { %2220 = vmatpush3.bf16.msra.mxu0 %v2217_v36 }
 0x1e3   : > { %2222 = vmatprep.subr.bf16.mxu0 %v2221_v39 }
 0x1e6   : > { %2224 = vmatpush3.bf16.msra.mxu0 %v2221_v39  ;;  %v680_v39 = vld [vmem:[%s2682_s4 + $0x8] sm:$0xff] }
 0x1e7   : > { %2226 = vmatprep.subr.bf16.mxu0 %v2225_v44 }
 0x1ea   : > { %2228 = vmatpush3.bf16.msra.mxu0 %v2225_v44 }
 0x2b0   : > { %v2096_v28 = vpop.f32.mrb[2].mxu0 }
 0x2b1   : > { %v944_v29 = vpop.f32.mrb[3].mxu0 }
 0x2b2   : > { %v2209_v30 = vpack.c.bf16 %v2096_v28, %v944_v29  ;;  %v1278_v29 = vld [vmem:[%s2894_s13] sm:$0xff] }
 0x2b4   : > { %2210 = vmatprep.subr.bf16.mxu1 %v2209_v30 }
 0x2b5   : > { %2212 = vmatpush3.bf16.msra.mxu1 %v2209_v30  ;;  %v1279_v30 = vld [vmem:[%s2894_s13 + $0x8] sm:$0x7f] }
 0x2b6   : > { %2231 = vmatprep.subr.msk.bf16.mxu1 %vm2691_vm6, %v2229_v9  ;;  %v2235_v31 = vpack.c.bf16 %v1279_v30, %v1278_v29 }
 0x2b8   : > { %2102 = vmatmul.mubr.msk.f32.vlgmr.msra.gmra.mrb[2].mxu1 %vm771_vm1, %v2592_v10  ;;  %2237 = vmatprep.subr.msk.bf16.mxu0 %vm2691_vm6, %v2235_v31 }
 0x2b9   : > { %2234 = vmatpush3.bf16.msk.msra.mxu1 %vm2691_vm6, %v2229_v9 }
 0x2ba   : > { %2248 = vmatprep.subr.bf16.mxu1 %v2413_v38 }
 0x38b   : > { %v2103_v43 = vpop.f32.mrb[2].mxu1 }
 0x38c   : > { %v1026_v45 = vpop.f32.mrb[3].mxu1  ;;  %v1032_v46 = vadd.f32 %v2103_v43, %v1980_v40 }
 0x38d   : > { %v1027_v47 = vadd.f32 %v1980_v40, %v1026_v45 }
 0x38e   : > { %v1036_v49 = vmax.f32 %v1032_v46, 0.0 }
 0x38f   : > { %v1035_v48 = vmax.f32 %v1027_v47, 0.0 }
 0x390   : > { %v1038_v51 = vmul.f32 %v1036_v49, %v2616_v26 }
 0x391   : > { %v1037_v50 = vmul.f32 %v1035_v48, %v2613_v18 }
 0x393   : > { %1041 = vrot.lane.b32.xlu1 %v1037_v50, %s2411_s21 }
 0x397   : > { %1043 = vrot.lane.b32.xlu1 %v1038_v51, %s2411_s21  ;;  %s639_s21 = sand.u32 1, %s2400_s30  }
 0x398   : > { %s640_s2 = scalar_lea.vmem [#allocation2], %s639_s21  ;;  %s1823_s28 = scalar_lea.sflag [#allocation3], %s639_s21 }
 0x399   : > { %s1840_s25 = sshll.u32 %s640_s2, 4  ;;  %s2840_s25 = int_to_ptr.vmem [resolvable:$true] %s1840_s25 }
 0x39a   : > { %s2346_s4 = scalar_lea.vmem %s2840_s25, 16 }
 0x39b   : > { %p2347_p11 = scmp.ne.s32.totalorder %s2840_s25, %s2346_s4 }
 0x39d   : > { %p2348_p12 = pnand %p2347_p11, %p2556_p5 }
 0x39f   : > { %p2349_p13 = pneg %p2348_p12 }
 0x405   : > { %v1042_v53 = vpop.permute.xlu1 %1041 }
 0x406   : > { %v1047_v55 = vsel %vm871_vm2, %v865_v25, %v1042_v53 }
 0x407   : > { %v1056_v56 = vmul.f32 %v1983_v52, %v1047_v55 }
 0x409   : > { %v1065_v57 = vadd.f32 %v1984_v54, %v1056_v56  ;;  %v1044_v58 = vpop.permute.xlu1 %1043 }
 0x40a   : > { %v1048_v59 = vsel %vm871_vm2, %v866_v27, %v1044_v58 }
 0x40b   : > { %v2661_v60 = vmul.f32 %v1065_v57, %v2613_v18  ;;  %v1057_v61 = vmul.f32 %v1983_v52, %v1048_v59 }
 0x40d   : > { %v1066_v62 = vadd.f32 %v1984_v54, %v1057_v61  ;;  %2120 = vmatprep.mubr.msk.f32.mxu0 %vm1077_vm3, %v2661_v60  ;;  %v1159_v63 = vmul.f32 %v2661_v60, %v2661_v60 }
 0x40f   : > { %v2668_v0 = vmul.f32 %v1066_v62, %v2616_v26  ;;  %v1161_v1 = vsel %vm1077_vm3, %v1159_v63, 0.0 }
 0x410   : > { %1162 = vadd.xlane.f32.xlu0 %v1161_v1 }
 0x411   : > { %2121 = vmatmul.mubr.msk.f32.vlgmr.msra.gmra.mrb[4].mxu0 %vm1077_vm3, %v2668_v0  ;;  %v1160_v2 = vmul.f32 %v2668_v0, %v2668_v0  ;;  %v2246_v4 = vpack.c.bf16 %v2668_v0, %v2661_v60 }
 0x412   : > { %2240 = vmatpush3.bf16.msk.msra.mxu0 %vm2691_vm6, %v2235_v31 }
 0x413   : > { %v1164_v5 = vsel %vm1077_vm3, %v1160_v2, 0.0 }
 0x414   : > { %1165 = vadd.xlane.f32.xlu1 %v1164_v5 }
 0x425   : > { %1448 = vperm.xlu1 %2325, %v680_v39  }
 0x426   : > { %1443 = vperm.xlu0 %2324, %v679_v6  }
 0x49d   : > { %v1163_v14 = vpop.xlane.xlu0 %1162 }
 0x49e   : > { %v1174_v20 = vadd.f32 %v1987_v13, %v1163_v14 }
 0x4a1   : > { %v1166_v12 = vpop.xlane.xlu1 %1165 }
 0x4a2   : > { %v1175_v16 = vadd.f32 %v1987_v13, %v1166_v12 }
 0x4e4   : > { %v2122_v15 = vpop.f32.mrb[4].mxu0 }
 0x4e5   : > { %v1177_v17 = vmul.f32 2.0, %v2122_v15  ;;  %v1150_v19 = vpop.f32.mrb[5].mxu0 }
 0x4e6   : > { %v1176_v21 = vmul.f32 2.0, %v1150_v19 }
 0x4e7   : > { %v1179_v22 = vsub.f32 %v1175_v16, %v1177_v17 }
 0x4e8   : > { %v1178_v23 = vsub.f32 %v1174_v20, %v1176_v21 }
 0x4e9   : > { %v1181_v24 = vadd.f32 1.0, %v1179_v22 }
 0x4ea   : > { %v1180_v25 = vadd.f32 1.0, %v1178_v23 }
 0x4ec   : > { %2326 = vrcp.f32 %v1180_v25 }
 0x4ed   : > { %2328 = vrcp.f32 %v1181_v24 }
 0x4f6   : > { %v2327_v27 = vpop.eup %2326 }
 0x4f7   : > { %v2329_v28 = vpop.eup %2328  ;;  %2127 = vmatprep.mubr.msk.f32.mxu1 %vm1188_vm7, %v2327_v27 }
 0x4f8   : > { %2128 = vmatmul.mubr.msk.f32.vlgmr.msra.gmra.mrb[4].mxu1 %vm1188_vm7, %v2329_v28 }
 0x5cb   : > { %v2129_v32 = vpop.f32.mrb[4].mxu1 }
 0x5cc   : > { %2330 = vrcp.f32 %v2129_v32  ;;  %v1265_v33 = vpop.f32.mrb[5].mxu1 }
 0x5cd   : > { %2332 = vrcp.f32 %v1265_v33 }
 0x5d6   : > { %v2331_v34 = vpop.eup %2330 }
 0x5d7   : > { %v2333_v35 = vpop.eup %2332  ;;  %v1277_v37 = vmul.f32 %v2331_v34, %v2329_v28 }
 0x5d8   : > { %v1275_v36 = vmul.f32 %v2333_v35, %v2327_v27  ;;  %v2415_v27 = vmov 0.0  }
 0x5d9   : > { %2183 = vmatprep.mubr.msk.f32.mxu1 %vm2414_vm13, %v2415_v27 }
 0x5da   : > { %2134 = vmatprep.mubr.msk.f32.mxu0 %vm1188_vm7, %v1275_v36 }
 0x5db   : > { %2135 = vmatmul.mubr.msk.f32.vlgmr.msra.gmra.mrb[6].mxu0 %vm1188_vm7, %v1277_v37 }
 0x5dc   : > { %2141 = vmatprep.mubr.msk.f32.mxu0 %vm771_vm1, %v2584_v3  ;;  %v1449_v3 = vpop.permute.xlu1 %1448 }
 0x6ae   : > { %v2136_v40 = vpop.f32.mrb[6].mxu0 }
 0x6af   : > { %v1365_v41 = vmul.f32 %v2136_v40, %v2616_v26  ;;  %v1355_v42 = vpop.f32.mrb[7].mxu0  ;;  %v1444_v26 = vpop.permute.xlu0 %1443 }
 0x6b0   : > { %v1364_v43 = vmul.f32 %v1355_v42, %v2613_v18 }
 0x6b2   : > { %v2241_v44 = vpack.c.bf16 %v1365_v41, %v1364_v43 }
 0x6b4   : > { %2242 = vmatprep.subr.bf16.mxu0 %v2241_v44 }
 0x6b5   : > { %2244 = vmatpush3.bf16.msra.mxu0 %v2241_v44  ;;  %v1642_v44 = vld [vmem:[%s2895_s14] sm:$0xff] }
 0x6b6   : > { %2245 = vmatprep.subr.bf16.mxu0 %v2413_v38 }
 0x6b8   : > { %2142 = vmatmul.mubr.msk.f32.vlgmr.msra.gmra.mrb[8].mxu0 %vm771_vm1, %v2592_v10 }
 0x6b9   : > { %2247 = vmatpush3.bf16.msra.mxu0 %v2246_v4  ;;  %v1476_v4 = vlaneseq  ;;  %2148 = vmatprep.mubr.msk.f32.mxu0 %vm2414_vm13, %v2415_v27 }
 0x6ba   : > { %2272 = vmatprep.subr.bf16.mxu0 %v2413_v38 }
 0x6bb   : > { %v1477_v5 = vand.u32 127, %v1476_v4 }
 0x78b   : > { %v2143_v18 = vpop.f32.mrb[8].mxu0 }
 0x78c   : > { %v1452_v45 = vmul.f32 %v2143_v18, %v1449_v3  ;;  %v1432_v10 = vpop.f32.mrb[9].mxu0  ;;  %v1643_v3 = vld [vmem:[%s2895_s14 + $0x8] sm:$0xff]  ;;  %v1644_v18 = vld [vmem:[%s2895_s14 + $0x10] sm:$0xff] }
 0x78d   : > { %v1451_v46 = vmul.f32 %v1444_v26, %v1432_v10  ;;  %v2249_v26 = vpack.c.bf16 %v1643_v3, %v1642_v44 }
 0x78e   : > { %1999 = vst.msk [vmem:[%s2733_s0 + $0x18] sm:$0xff] %vm1453_vm8, %v1452_v45  ;;  %v1457_v47 = vsel %vm1453_vm8, %v1452_v45, -inf }
 0x78f   : > { %1998 = vst.msk [vmem:[%s2733_s0 + $0x10] sm:$0xff] %vm1453_vm8, %v1451_v46  ;;  %1458 = vmax.xlane.f32.xlu1 %v1457_v47  ;;  %v1454_v48 = vsel %vm1453_vm8, %v1451_v46, -inf  ;;  %2250 = vmatpush3.bf16.msra.mxu1 %v2249_v26  ;;  %v1647_v47 = vld [vmem:[%s2895_s14 + $0x28] sm:$0xff] }
 0x790   : > { %1455 = vmax.xlane.f32.xlu0 %v1454_v48  ;;  %2251 = vmatprep.subr.bf16.mxu1 %v2413_v38 }
 0x81c   : > { %v1459_v49 = vpop.xlane.xlu1 %1458 }
 0x81d   : > { %v1461_v50 = vsub.f32 %v1452_v45, %v1459_v49  ;;  %v1456_v51 = vpop.xlane.xlu0 %1455  ;;  %v1645_v45 = vld [vmem:[%s2895_s14 + $0x18] sm:$0xff]  ;;  %v1648_v49 = vld [vmem:[%s2895_s14 + $0x30] sm:$0xff] }
 0x81e   : > { %v1460_v52 = vsub.f32 %v1451_v46, %v1456_v51  ;;  %v2252_v10 = vpack.c.bf16 %v1645_v45, %v1644_v18  ;;  %v1646_v46 = vld [vmem:[%s2895_s14 + $0x20] sm:$0xff] }
 0x81f   : > { %v1464_v53 = vmul.f32 1.442695, %v1461_v50  ;;  %v2255_v48 = vpack.c.bf16 %v1647_v47, %v1646_v46  ;;  %v1649_v50 = vld [vmem:[%s2895_s14 + $0x38] sm:$0xff] }
 0x820   : > { %v1462_v54 = vmul.f32 1.442695, %v1460_v52  ;;  %2253 = vmatpush3.bf16.msra.mxu1 %v2252_v10  ;;  %v2258_v51 = vpack.c.bf16 %v1649_v50, %v1648_v49  ;;  %v1650_v52 = vld [vmem:[%s2895_s14 + $0x40] sm:$0xff] }
 0x821   : > { %2254 = vmatprep.subr.bf16.mxu1 %v2413_v38 }
 0x822   : > { %2334 = vpow2.f32 %v1462_v54 }
 0x823   : > { %2336 = vpow2.f32 %v1464_v53  ;;  %v1651_v53 = vld [vmem:[%s2895_s14 + $0x48] sm:$0xff] }
 0x824   : > { %2256 = vmatpush3.bf16.msra.mxu1 %v2255_v48  ;;  %v2261_v54 = vpack.c.bf16 %v1651_v53, %v1650_v52 }
 0x825   : > { %2257 = vmatprep.subr.bf16.mxu1 %v2413_v38 }
 0x828   : > { %2259 = vmatpush3.bf16.msra.mxu1 %v2258_v51 }
 0x829   : > { %2260 = vmatprep.subr.bf16.mxu1 %v2413_v38 }
 0x82c   : > { %v2335_v55 = vpop.eup %2334  ;;  %2262 = vmatpush3.bf16.msra.mxu1 %v2261_v54 }
 0x82d   : > { %v1466_v56 = vsel %vm1453_vm8, %v2335_v55, 0.0  ;;  %v2337_v57 = vpop.eup %2336  ;;  %2263 = vmatprep.subr.bf16.mxu1 %v2413_v38 }
 0x82e   : > { %1467 = vadd.xlane.f32.xlu0 %v1466_v56  ;;  %v1469_v58 = vsel %vm1453_vm8, %v2337_v57, 0.0  ;;  %v1653_v56 = vld [vmem:[%s2895_s14 + $0x58] sm:$0xff] }
 0x832   : > { %1470 = vadd.xlane.f32.xlu0 %v1469_v58  ;;  %v1654_v58 = vld [vmem:[%s2895_s14 + $0x60] sm:$0xff] }
 0x8bb   : > { %v1468_v59 = vpop.xlane.xlu0 %1467 }
 0x8bc   : > { %2338 = vrcp.f32 %v1468_v59  ;;  %v1655_v59 = vld [vmem:[%s2895_s14 + $0x68] sm:$0xff] }
 0x8bf   : > { %v1471_v60 = vpop.xlane.xlu0 %1470 }
 0x8c0   : > { %2340 = vrcp.f32 %v1471_v60  ;;  %v2267_v60 = vpack.c.bf16 %v1655_v59, %v1654_v58 }
 0x8c6   : > { %v2339_v61 = vpop.eup %2338 }
 0x8c7   : > { %v1474_v62 = vmul.f32 %v2339_v61, %v2335_v55  ;;  %v1652_v55 = vld [vmem:[%s2895_s14 + $0x50] sm:$0xff] }
 0x8c8   : > { %v1656_v61 = vld [vmem:[%s2895_s14 + $0x70] sm:$0xff] }
 0x8c9   : > { %v1478_v63 = vsel %vm1453_vm8, %v1474_v62, -inf }
 0x8ca   : > { %v2341_v0 = vpop.eup %2340  ;;  %1479 = vmax.xlane.f32.xlu1 %v1478_v63 }
 0x8cb   : > { %v1475_v1 = vmul.f32 %v2341_v0, %v2337_v57  ;;  %v2264_v57 = vpack.c.bf16 %v1653_v56, %v1652_v55  ;;  %v1730_v0 = vld [vmem:[%s2897_s16] sm:$0xff] }
 0x8cd   : > { %v1481_v2 = vsel %vm1453_vm8, %v1475_v1, -inf  ;;  %2265 = vmatpush3.bf16.msra.mxu1 %v2264_v57 }
 0x8ce   : > { %1482 = vmax.xlane.f32.xlu0 %v1481_v2  ;;  %2266 = vmatprep.subr.bf16.mxu1 %v2413_v38 }
 0x8d1   : > { %2268 = vmatpush3.bf16.msra.mxu1 %v2267_v60 }
 0x8d2   : > { %2269 = vmatprep.subr.bf16.mxu1 %v2413_v38 }
 0x957   : > { %v1480_v6 = vpop.xlane.xlu1 %1479 }
 0x958   : > { %vm1484_vm9 = vcmp.ge.f32.partialorder %v1474_v62, %v1480_v6 }
 0x959   : > { %v1486_v7 = vsel %vm1484_vm9, %v1477_v5, 3 }
 0x95a   : > { %v1488_v8 = vsel %vm1453_vm8, %v1486_v7, 2147483647 }
 0x95b   : > { %v1483_v9 = vpop.xlane.xlu0 %1482  ;;  %v1490_v11 = vshra.s32 %v1488_v8, 16  ;;  %v1489_v17 = vand.u32 65535, %v1488_v8 }
 0x95c   : > { %vm1485_vm10 = vcmp.ge.f32.partialorder %v1475_v1, %v1483_v9  ;;  %v1732_v9 = vld [vmem:[%s2897_s16 + $0x10] sm:$0xff] }
 0x95d   : > { %v1487_v12 = vsel %vm1485_vm10, %v1477_v5, 3  ;;  %v1492_v13 = vcvt.s32.f32 %v1490_v11  ;;  %v1491_v20 = vcvt.s32.f32 %v1489_v17  ;;  %v1733_v11 = vld [vmem:[%s2897_s16 + $0x18] sm:$0xff]  ;;  %v1734_v17 = vld [vmem:[%s2898_s17] sm:$0x1] }
 0x95e   : > { %v1503_v14 = vsel %vm1453_vm8, %v1487_v12, 2147483647  ;;  %v2276_v12 = vpack.c.bf16 %v1733_v11, %v1732_v9 }
 0x95f   : > { %1493 = vmin.xlane.f32.xlu1 %v1492_v13  ;;  %v1505_v15 = vshra.s32 %v1503_v14, 16  ;;  %v1504_v21 = vand.u32 65535, %v1503_v14 }
 0x961   : > { %v1507_v16 = vcvt.s32.f32 %v1505_v15  ;;  %v1506_v24 = vcvt.s32.f32 %v1504_v21 }
 0x963   : > { %1508 = vmin.xlane.f32.xlu0 %v1507_v16 }
 0x9ec   : > { %v1494_v19 = vpop.xlane.xlu1 %1493 }
 0x9ed   : > { %vm1495_vm11 = vcmp.eq.f32.partialorder %v1492_v13, %v1494_v19  ;;  %v1500_v28 = vcvt.f32.s32 %v1494_v19 }
 0x9ee   : > { %v1496_v22 = vsel %vm1495_vm11, %v1491_v20, inf }
 0x9ef   : > { %1497 = vmin.xlane.f32.xlu1 %v1496_v22  ;;  %v1501_v30 = vshll.u32 %v1500_v28, 16 }
 0x9f0   : > { %v1509_v23 = vpop.xlane.xlu0 %1508 }
 0x9f1   : > { %vm1510_vm12 = vcmp.eq.f32.partialorder %v1507_v16, %v1509_v23  ;;  %v1515_v31 = vcvt.f32.s32 %v1509_v23 }
 0x9f2   : > { %v1511_v25 = vsel %vm1510_vm12, %v1506_v24, inf }
 0x9f3   : > { %1512 = vmin.xlane.f32.xlu0 %v1511_v25  ;;  %v1516_v35 = vshll.u32 %v1515_v31, 16 }
 0xa7c   : > { %v1498_v29 = vpop.xlane.xlu1 %1497 }
 0xa7d   : > { %v1499_v32 = vcvt.f32.s32 %v1498_v29 }
 0xa7f   : > { %v1502_v33 = vadd.s32 %v1501_v30, %v1499_v32 }
 0xa80   : > { %v1513_v34 = vpop.xlane.xlu0 %1512 }
 0xa81   : > { %vm1518_vm14 = vcmp.eq.s32.totalorder %v1477_v5, %v1502_v33  ;;  %v1514_v36 = vcvt.f32.s32 %v1513_v34 }
 0xa82   : > { %v1996_v37 = vsel %vm1518_vm14, 1.0, %v2415_v27 }
 0xa83   : > { %v1517_v39 = vadd.s32 %v1516_v35, %v1514_v36  ;;  %v1524_v40 = vmul.f32 %v1996_v37, %v1474_v62  ;;  %v1657_v62 = vld [vmem:[%s2895_s14 + $0x78] sm:$0xff] }
 0xa84   : > { %v2270_v63 = vpack.c.bf16 %v1657_v62, %v1656_v61 }
 0xa85   : > { %vm1519_vm15 = vcmp.eq.s32.totalorder %v1477_v5, %v1517_v39  ;;  %1531 = vxpose.xlu1.b32.start [1/2] (short) (narrow) %v1524_v40, 8  ;;  %1526 = vst.msk [vmem:[%s2733_s0] sm:$0xff] %vm1453_vm8, %v1524_v40 }
 0xa86   : > { %v1997_v41 = vsel %vm1519_vm15, 1.0, %v2415_v27  ;;  %2271 = vmatpush3.bf16.msra.mxu1 %v2270_v63 }
 0xa87   : > { %v1525_v42 = vmul.f32 %v1997_v41, %v1475_v1  ;;  %v1731_v1 = vld [vmem:[%s2897_s16 + $0x8] sm:$0xff] }
 0xa88   : > { %v2273_v2 = vpack.c.bf16 %v1731_v1, %v1730_v0 }
 0xa89   : > { %1527 = vst.msk [vmem:[%s2733_s0 + $0x8] sm:$0xff] %vm1453_vm8, %v1525_v42  ;;  %1532 = vxpose.xlu1.b32.end [2/2] (short) (narrow) %v1525_v42, 8  ;;  %s2350_s0 = sshll.u32 %s2417_s1, 4  ;;  %s2351_s0 = int_to_ptr.vmem [resolvable:$false] %s2350_s0 }
 0xa8a   : > { %s2352_s29 = scalar_lea.vmem %s2351_s0, 32  ;;  %p2353_p0 = scmp.lt.s32.totalorder %s2840_s25, %s2351_s0 }
 0xa8b   : > { %p2354_p1 = scmp.lt.s32.totalorder %s2352_s29, %s2346_s4 }
 0xa8d   : > { %p2355_p2 = por %p2354_p1, %p2353_p0 }
 0xa8f   : > { %p2356_p3 = pnand %p2355_p2, %p2349_p13 }
 0xb05   : > { %v1547_v43 = vpop.trf.xlu1 }
 0xb06   : > { %2149 = vmatmul.mubr.msk.f32.vlgmr.msra.gmra.mrb[10].mxu0 %vm771_vm1, %v1547_v43 }
 0xb07   : > { %2194 = vmatprep.mubr.msk.f32.mxu0 %vm2414_vm13, %v2415_v27  ;;  %2274 = vmatpush3.bf16.msra.mxu0 %v2273_v2 }
 0xb08   : > { %2275 = vmatprep.subr.bf16.mxu0 %v2413_v38  ;;  %v1658_v38 = vld [vmem:[%s2896_s15] sm:$0x1] }
 0xb0b   : > { %2277 = vmatpush3.bf16.msra.mxu0 %v2276_v12 }
 0xbd9   : > { %v1632_v4 = vpop.f32.mrb[10].mxu0 }
 0xbda   : > { %v1637_v5 = vrot.slane %v1632_v4, 1  ;;  %v2150_v6 = vpop.f32.mrb[11].mxu0 }
 0xbdc   : > { %1638 = vrot.lane.b32.xlu0 %v1637_v5, %s2416_s23 }
 0xc4e   : > { %v1639_v7 = vpop.permute.xlu0 %1638 }
 0xc4f   : > { %v1641_v8 = vsel %vm1077_vm3, %v1632_v4, %v1639_v7 }
 0xc50   : > { %2184 = vmatmul.mubr.f32.vlgmr.msra.gmra.mrb[6].mxu1 %v1641_v8 }
 0xd23   : > { %v1725_v13 = vpop.f32.mrb[6].mxu1 }
 0xd24   : > { %v1726_v14 = vadd.f32 %v1725_v13, %v1658_v38  ;;  %v2185_v15 = vpop.f32.mrb[7].mxu1 }
 0xd26   : > { %v1729_v16 = vmax.f32 %v1726_v14, 0.0 }
 0xd28   : > { %2195 = vmatmul.mubr.msk.f32.vlgmr.msra.gmra.mrb[12].mxu0 %vm871_vm2, %v1729_v16 }
 0xdfb   : > { %v1804_v19 = vpop.f32.mrb[12].mxu0 }
 0xdfc   : > { %v1805_v20 = vadd.f32 %v1804_v19, %v1734_v17  ;;  %v2196_v21 = vpop.f32.mrb[13].mxu0 }
 0xdfe   : > { %v1809_v22 = vsel %vm1808_vm0, %v1805_v20, -inf }
 0xdff   : > { %1810 = vmax.xlane.f32.xlu0 %v1809_v22 }
 0xe8c   : > { %v1811_v23 = vpop.xlane.xlu0 %1810 }
 0xe8d   : > { %v1812_v24 = vsub.f32 %v1805_v20, %v1811_v23 }
 0xe8f   : > { %v1813_v25 = vmul.f32 1.442695, %v1812_v24 }
 0xe91   : > { %2342 = vpow2.f32 %v1813_v25 }
 0xe9b   : > { %v2343_v27 = vpop.eup %2342 }
 0xe9c   : > { %v1815_v28 = vsel %vm1808_vm0, %v2343_v27, 0.0 }
 0xe9d   : > { %1816 = vadd.xlane.f32.xlu1 %v1815_v28 }
 0xf2a   : > { %v1817_v29 = vpop.xlane.xlu1 %1816 }
 0xf2b   : > { %2344 = vlog2.f32 %v1817_v29 }
 0xf35   : > { %v2345_v30 = vpop.eup %2344 }
 0xf36   : > { %v1819_v31 = vmul.f32 0.6931472, %v2345_v30 }
 0xf38   : > { %v1820_v32 = vsub.f32 %v1812_v24, %v1819_v31 }
 0xf3a   : > { %1821 = vst.msk [vmem:[%s640_s2] sm:$0x1] %vm1808_vm0, %v1820_v32 }
 0xf3b   : > { %2359 = shalt.err (!%p2356_p3)
}
 0xf3c   : > { %s2360_s20 = scalar_lea.hbm %s2838_s27, 16  ;;  %s2364_s22 = scalar_lea.hbm %s2929_s24, 32 }
 0xf3d   : > { %p2361_p4 = scmp.ne.s32.totalorder %s2838_s27, %s2360_s20  ;;  %p2365_p9 = scmp.lt.u32.totalorder %s2838_s27, %s2929_s24 }
 0xf3e   : > { %p2366_p10 = scmp.lt.u32.totalorder %s2364_s22, %s2360_s20  ;;  %p2368_p12 = scmp.lt.u32.totalorder %s2360_s20, %s2838_s27 }
 0xf3f   : > { %p2362_p7 = pnand %p2361_p4, %p2556_p5 }
 0xf40   : > { %p2367_p11 = por %p2366_p10, %p2365_p9 }
 0xf41   : > { %p2363_p8 = pneg %p2362_p7 }
 0xf42   : > { %p2369_p13 = por %p2368_p12, %p2367_p11 }
 0xf44   : > { %p2370_p0 = pnand %p2369_p13, %p2363_p8 }
 0xf46   : > { %2373 = shalt.err (!%p2370_p0)
}
 0xf47   : > { %2278 = dma.vmem_to_hbm [thread:$0]  (%p2556_p5), %s2840_s25, 16, %s2838_s27, %s1823_s28  }
 0xf48 PF: > { %s2930_s23 = sld [smem:[#allocation7_spill]]  ;;  %s2931_s4 = sld [smem:[#allocation5_spill]] }
 0xf4e   : > { %p2284_p1 = scmp.ge.s32.totalorder %s2930_s23, 2  ;;  %s1855_s0 = sand.u32 1, %s2931_s4  }
 0xf4f   : > { %s1856_s29 = scalar_lea.sflag [#allocation3], %s1855_s0 }
 0xf50   : > { %p2281_p2 = pnand %p2284_p1, %p2560_p6 }
 0xf52   : > { %2391 = dma.done.wait (!%p2281_p2), %s1856_s29, 16  }
 0xf53   : > { %2393 = vsyncadd (!%p2281_p2), %s1856_s29, 4294967280  ;;  %s2933_s21 = sld [smem:[#allocation8_spill]]  ;;  %s2934_s20 = sld [smem:[#allocation6_spill]] }
 0xf54   : > { %s2935_s18 = sld [smem:[#allocation9_spill]]  ;;  %s2936_s0 = smov %s2400_s30 }
 0xf59   : > { %p30_p3 = scmp.ge.s32.totalorder %s2933_s21, 4   ;;  %s2937_s30 = smov %s2934_s20 }
 0xf5a   : > { %s2938_s20 = smov %s2935_s18 }
 0xf5b   :  { %32 = sbr.rel (!%p30_p3) target bundleno = 10 (0xa), region = 149 }
 0xf62   :  { %1868 = vsyncpa [#allocation3], 1 }
 0xf63   :  { %1870 = vsyncpa [#allocation3 + $0x1], 1 }

</bundles_post_ra>
